<compile_context>
chip_gen: v7x
topology: tpu7x:2x2x1
jax: 0.10.0
libtpu: 0.0.40
codegen_flags: <defaults>
</compile_context>

<pallas_src>
import numpy as np
import jax
import jax.numpy as jnp
from jax.experimental import pallas as pl
from jax.experimental.pallas import tpu as pltpu


KH = KW = 3
PAD = 1


# ----------------------------- setup-time helpers ---------------------------

def _choose_nb(N, H):
    """Largest batch fold Nb that divides N, keeps >= 2 grid steps and M <= 256."""
    best = 1
    cap = max(1, 256 // max(H, 1))
    for nb in range(1, N + 1):
        if N % nb:
            continue
        if nb > cap:
            break
        if N // nb >= 2 or N == 1:
            best = nb
    return best


def _fold_conv1_weight(w1, Cin, C1, W, Lpad):
    """Banded + im2col folded conv1 weight over the *padded* width.

    Shape (KH*Lpad, W*C1): row block `ky` consumes the ky-th row-shifted padded
    input row (lane index wi*Cin + ci, zero-padded to Lpad lanes); kx offsets
    are baked in (output column wo reads padded input columns wo .. wo+2).
    """
    w = np.asarray(w1, np.float32).reshape(KH, KW, Cin, C1)
    big = np.zeros((KH * Lpad, W * C1), np.float32)
    for ky in range(KH):
        for kx in range(KW):
            for wo in range(W):
                wi = wo + kx                      # padded-width input column
                r = ky * Lpad + wi * Cin
                c = wo * C1
                big[r:r + Cin, c:c + C1] = w[ky, kx]
    return jnp.asarray(big, jnp.bfloat16)


def _fold_conv2_weight(w2, C1, C2, W):
    """Banded + im2col folded conv2 weight over the *unpadded* width.

    Shape (KH*W*C1, W*C2); horizontal zero padding is realized by simply
    omitting the out-of-range bands.
    """
    N1 = W * C1
    w = np.asarray(w2, np.float32).reshape(KH, KW, C1, C2)
    big = np.zeros((KH * N1, W * C2), np.float32)
    for ky in range(KH):
        for kx in range(KW):
            for wo in range(W):
                wi = wo + kx - 1
                if 0 <= wi < W:
                    r = ky * N1 + wi * C1
                    c = wo * C2
                    big[r:r + C1, c:c + C2] = w[ky, kx]
    return jnp.asarray(big, jnp.bfloat16)


# ----------------------------- fused Pallas kernel --------------------------

def _make_fused_cnn(N, Nb, H, W, Cin, C1, C2, Lpad):
    """Fused 2-layer 3x3 'SAME' conv + bias + ReLU; Nb batch images per grid step."""
    Hp = H + 2 * PAD
    N1, N2 = W * C1, W * C2
    K1, K2 = KH * Lpad, KH * N1

    def kernel(x_ref, w1_ref, b1_ref, w2_ref, b2_ref, o1_ref, o2_ref):
        # ---------------- conv1: in-kernel im2col + ONE MXU dot ----------------
        parts = []
        for n in range(Nb):
            xn = x_ref[n]                                            # (Hp, Lpad) f32
            parts.append(jnp.concatenate(
                [xn[ky:ky + H, :] for ky in range(KH)], axis=-1))    # (H, 3*Lpad)
        lhs1 = parts[0] if Nb == 1 else jnp.concatenate(parts, axis=0)
        acc1 = jnp.dot(lhs1.astype(jnp.bfloat16), w1_ref[...],
                       preferred_element_type=jnp.float32)           # (Nb*H, N1)
        f1 = jnp.maximum(acc1 + b1_ref[...], 0.0)                    # f32
        for n in range(Nb):
            o1_ref[n] = f1[n * H:(n + 1) * H, :].astype(o1_ref.dtype)

        # -------- conv2: vertical padding via register row-shifts, ONE dot ------
        zero_row = jnp.zeros((1, N1), jnp.float32)
        parts = []
        for n in range(Nb):
            fn = f1[n * H:(n + 1) * H, :]                            # (H, N1)
            up = jnp.concatenate([zero_row, fn[:H - 1, :]], axis=0)  # row h-1
            dn = jnp.concatenate([fn[1:, :], zero_row], axis=0)      # row h+1
            parts.append(jnp.concatenate([up, fn, dn], axis=-1))     # (H, 3*N1)
        lhs2 = parts[0] if Nb == 1 else jnp.concatenate(parts, axis=0)
        acc2 = jnp.dot(lhs2.astype(jnp.bfloat16), w2_ref[...],
                       preferred_element_type=jnp.float32)           # (Nb*H, N2)
        f2 = jnp.maximum(acc2 + b2_ref[...], 0.0)
        for n in range(Nb):
            o2_ref[n] = f2[n * H:(n + 1) * H, :].astype(o2_ref.dtype)

    grid_spec = pltpu.PrefetchScalarGridSpec(
        num_scalar_prefetch=0,
        grid=(N // Nb,),                       # >= 2 blocks keeps both v7x TCs busy
        in_specs=[
            pl.BlockSpec((Nb, Hp, Lpad), lambda n: (n, 0, 0)),       # padded input
            pl.BlockSpec((K1, N1), lambda n: (0, 0)),                # folded w1 (bf16)
            pl.BlockSpec((1, N1), lambda n: (0, 0)),                 # folded b1 (f32)
            pl.BlockSpec((K2, N2), lambda n: (0, 0)),                # folded w2 (bf16)
            pl.BlockSpec((1, N2), lambda n: (0, 0)),                 # folded b2 (f32)
        ],
        out_specs=[
            pl.BlockSpec((Nb, H, N1), lambda n: (n, 0, 0)),          # f1, lane-dense
            pl.BlockSpec((Nb, H, N2), lambda n: (n, 0, 0)),          # f2, lane-dense
        ],
    )

    return pl.pallas_call(
        kernel,
        out_shape=(jax.ShapeDtypeStruct((N, H, N1), jnp.float32),
                   jax.ShapeDtypeStruct((N, H, N2), jnp.float32)),
        grid_spec=grid_spec,
        compiler_params=pltpu.CompilerParams(
            dimension_semantics=("parallel",)),
    )


# ------------------------------ module wrapper -------------------------------

def make_torch_filter_fmaps(params, lmask, fmask, x_shape):
    """Pallas-backed equivalent of Torch_filter_fmaps.

    All weight folding / layout prep is done ONCE here (hoisted out of the
    per-call hot path); the returned forward(x_nchw) only does the NCHW ->
    lane-folded input shuffle, one fused pallas_call and the static channel
    gather.
    """
    (w1, b1), (w2, b2) = params
    N, Cin, H, W = x_shape
    C1, C2 = w1.shape[-1], w2.shape[-1]
    Hp, Wp = H + 2 * PAD, W + 2 * PAD
    N1, N2 = W * C1, W * C2

    # Lane-folded layout constraints; generalize the layout before relaxing.
    assert H % 8 == 0 and N1 % 128 == 0 and N2 % 128 == 0, (H, N1, N2)
    Lpad = ((Wp * Cin + 127) // 128) * 128       # pad input lanes to full vregs
    # Scaling guard: banded-folded weights grow ~O(W^2 * C^2); switch to a
    # C-on-lanes im2col layout before this trips (v7x has only 64 MiB VMEM).
    assert 2 * (KH * Lpad * N1 + KH * N1 * N2) < (8 << 20), "folded weights too large"

    w1big = _fold_conv1_weight(w1, Cin, C1, W, Lpad)
    w2big = _fold_conv2_weight(w2, C1, C2, W)
    b1big = jnp.tile(jnp.asarray(b1, jnp.float32), W).reshape(1, N1)
    b2big = jnp.tile(jnp.asarray(b2, jnp.float32), W).reshape(1, N2)

    Nb = _choose_nb(N, H)
    fused = _make_fused_cnn(N, Nb, H, W, Cin, C1, C2, Lpad)
    fm_idx = [jnp.asarray(fm, jnp.int32) for fm in fmask]

    def forward(x_nchw):
        # NCHW -> NHWC -> spatially zero-padded -> (N, Hp, Wp*Cin) lane-folded,
        # lane dim zero-padded to Lpad (full-width vld, MXU-friendly K).
        x_nhwc = jnp.transpose(x_nchw, (0, 2, 3, 1)).astype(jnp.float32)
        x_pad = jnp.pad(x_nhwc, ((0, 0), (PAD, PAD), (PAD, PAD), (0, 0)))
        x2d = x_pad.reshape(N, Hp, Wp * Cin)
        if Lpad > Wp * Cin:
            x2d = jnp.pad(x2d, ((0, 0), (0, 0), (0, Lpad - Wp * Cin)))

        f1_2d, f2_2d = fused(x2d, w1big, b1big, w2big, b2big)
        f1 = jnp.transpose(f1_2d.reshape(N, H, W, C1), (0, 3, 1, 2))   # NCHW
        f2 = jnp.transpose(f2_2d.reshape(N, H, W, C2), (0, 3, 1, 2))
        fmaps = [f1, f2]

        # TODO(synk): the static fmask gather could be fused into the kernel
        # epilogue as a lane permute; kept as a static XLA gather for clarity.
        outs = []
        for lm, fm in zip(lmask, fm_idx):
            cat = jnp.concatenate([fmaps[l] for l in lm], axis=1)
            outs.append(jnp.take(cat, fm, axis=1))
        return outs

    return jax.jit(forward)


# -------------------------------- main ---------------------------------------

if __name__ == "__main__":
    key = jax.random.PRNGKey(0)
    k1, k2, k3, k4, kx = jax.random.split(key, 5)

    N, Cin, H, W = 2, 4, 16, 16
    C1, C2 = 8, 8

    x_nchw = jax.random.normal(kx, (N, Cin, H, W), jnp.float32)
    w1 = jax.random.normal(k1, (3, 3, Cin, C1), jnp.float32) * 0.1
    b1 = jax.random.normal(k2, (C1,), jnp.float32) * 0.1
    w2 = jax.random.normal(k3, (3, 3, C1, C2), jnp.float32) * 0.1
    b2 = jax.random.normal(k4, (C2,), jnp.float32) * 0.1
    params = ((w1, b1), (w2, b2))

    # lmask / fmask analogous to the PyTorch module's constructor arguments.
    lmask = [[0], [0, 1]]
    fmask = [np.array([1, 3, 5], dtype=np.int32),
             np.array([0, 2, 7, 9, 12], dtype=np.int32)]

    forward = make_torch_filter_fmaps(params, lmask, fmask, x_nchw.shape)
    outs = forward(x_nchw)
    outs = [jax.block_until_ready(o) for o in outs]

    # Pure-JAX NCHW reference with matching numerics (bf16 operands, f32 accum).
    def ref_conv(x, w, b):
        y = jax.lax.conv_general_dilated(
            x.astype(jnp.bfloat16),
            jnp.transpose(w, (3, 2, 0, 1)).astype(jnp.bfloat16),
            (1, 1), "SAME",
            dimension_numbers=("NCHW", "OIHW", "NCHW"),
            preferred_element_type=jnp.float32)
        return jnp.maximum(y + b[None, :, None, None], 0.0)

    r1 = ref_conv(x_nchw, w1, b1)
    r2 = ref_conv(r1, w2, b2)
    ref_maps = [r1, r2]
    refs = [jnp.take(jnp.concatenate([ref_maps[l] for l in lm], axis=1),
                     jnp.asarray(fm), axis=1)
            for lm, fm in zip(lmask, fmask)]

    for o, r in zip(outs, refs):
        assert o.shape == r.shape, (o.shape, r.shape)
        np.testing.assert_allclose(np.asarray(o), np.asarray(r),
                                   rtol=2e-3, atol=2e-3)

    print("KERNEL_OK")
</pallas_src>

<mosaic_0001>
module attributes {stable_mosaic.version = 11 : i64} {
  func.func @kernel(%arg0: i32, %arg1: memref<1x18x128xf32, #tpu.memory_space<vmem>>, %arg2: memref<384x128xbf16, #tpu.memory_space<vmem>>, %arg3: memref<1x128xf32, #tpu.memory_space<vmem>>, %arg4: memref<384x128xbf16, #tpu.memory_space<vmem>>, %arg5: memref<1x128xf32, #tpu.memory_space<vmem>>, %arg6: memref<1x16x128xf32, #tpu.memory_space<vmem>>, %arg7: memref<1x16x128xf32, #tpu.memory_space<vmem>>) attributes {dimension_semantics = [#tpu.dimension_semantics<parallel>], iteration_bounds = array<i64: 2>, scalar_prefetch = 0 : i64, scratch_operands = 0 : i64, tpu.core_type = #tpu.core_type<tc>, window_params = [{transform_indices = @transform_0, window_bounds = array<i64: 1, 18, 128>}, {pipeline_mode = #tpu.pipeline_mode<synchronous>, transform_indices = @transform_1, window_bounds = array<i64: 384, 128>}, {pipeline_mode = #tpu.pipeline_mode<synchronous>, transform_indices = @transform_2, window_bounds = array<i64: 1, 128>}, {pipeline_mode = #tpu.pipeline_mode<synchronous>, transform_indices = @transform_3, window_bounds = array<i64: 384, 128>}, {pipeline_mode = #tpu.pipeline_mode<synchronous>, transform_indices = @transform_4, window_bounds = array<i64: 1, 128>}, {transform_indices = @transform_5, window_bounds = array<i64: 1, 16, 128>}, {transform_indices = @transform_6, window_bounds = array<i64: 1, 16, 128>}]} {
    %c0 = arith.constant 0 : index
    %c0_0 = arith.constant 0 : index
    %c0_1 = arith.constant 0 : index
    %0 = vector.load %arg1[%c0, %c0_0, %c0_1] : memref<1x18x128xf32, #tpu.memory_space<vmem>>, vector<1x18x128xf32>
    %1 = vector.shape_cast %0 : vector<1x18x128xf32> to vector<18x128xf32>
    %2 = vector.extract_strided_slice %1 {offsets = [0, 0], sizes = [16, 128], strides = [1, 1]} : vector<18x128xf32> to vector<16x128xf32>
    %3 = vector.extract_strided_slice %1 {offsets = [1, 0], sizes = [16, 128], strides = [1, 1]} : vector<18x128xf32> to vector<16x128xf32>
    %4 = vector.extract_strided_slice %1 {offsets = [2, 0], sizes = [16, 128], strides = [1, 1]} : vector<18x128xf32> to vector<16x128xf32>
    %5 = tpu.concatenate %2, %3, %4 in 1 : vector<16x128xf32>, vector<16x128xf32>, vector<16x128xf32> -> vector<16x384xf32>
    %6 = arith.truncf %5 : vector<16x384xf32> to vector<16x384xbf16>
    %c0_2 = arith.constant 0 : index
    %c0_3 = arith.constant 0 : index
    %7 = vector.load %arg2[%c0_2, %c0_3] : memref<384x128xbf16, #tpu.memory_space<vmem>>, vector<384x128xbf16>
    %cst = arith.constant dense<0.000000e+00> : vector<16x128xf32>
    %8 = tpu.matmul %6, %7, %cst {dimension_numbers = #tpu.dot_dimension_numbers<[1], [0], [0], [1], [0, 0, 1, 1], [], []>} : vector<16x384xbf16>, vector<384x128xbf16>, vector<16x128xf32> -> vector<16x128xf32>
    %c0_4 = arith.constant 0 : index
    %c0_5 = arith.constant 0 : index
    %9 = vector.load %arg3[%c0_4, %c0_5] : memref<1x128xf32, #tpu.memory_space<vmem>>, vector<1x128xf32>
    %10 = vector.broadcast %9 : vector<1x128xf32> to vector<16x128xf32>
    %11 = arith.addf %8, %10 : vector<16x128xf32>
    %cst_6 = arith.constant 0.000000e+00 : f32
    %12 = vector.broadcast %cst_6 : f32 to vector<16x128xf32>
    %13 = arith.maximumf %11, %12 : vector<16x128xf32>
    %c0_7 = arith.constant 0 : index
    %c0_8 = arith.constant 0 : index
    %c0_9 = arith.constant 0 : index
    %14 = vector.load %arg6[%c0_7, %c0_8, %c0_9] : memref<1x16x128xf32, #tpu.memory_space<vmem>>, vector<1x16x128xf32>
    %15 = vector.shape_cast %14 : vector<1x16x128xf32> to vector<16x128xf32>
    %16 = vector.shape_cast %13 : vector<16x128xf32> to vector<1x16x128xf32>
    tpu.vector_store %arg6[%c0_7, %c0_8, %c0_9], %16 {strides = array<i32>} : memref<1x16x128xf32, #tpu.memory_space<vmem>>, vector<1x16x128xf32>,
    %cst_10 = arith.constant 0.000000e+00 : f32
    %17 = vector.broadcast %cst_10 : f32 to vector<1x128xf32>
    %18 = vector.extract_strided_slice %13 {offsets = [0, 0], sizes = [15, 128], strides = [1, 1]} : vector<16x128xf32> to vector<15x128xf32>
    %19 = tpu.concatenate %17, %18 in 0 : vector<1x128xf32>, vector<15x128xf32> -> vector<16x128xf32>
    %20 = vector.extract_strided_slice %13 {offsets = [1, 0], sizes = [15, 128], strides = [1, 1]} : vector<16x128xf32> to vector<15x128xf32>
    %21 = tpu.concatenate %20, %17 in 0 : vector<15x128xf32>, vector<1x128xf32> -> vector<16x128xf32>
    %22 = tpu.concatenate %19, %13, %21 in 1 : vector<16x128xf32>, vector<16x128xf32>, vector<16x128xf32> -> vector<16x384xf32>
    %23 = arith.truncf %22 : vector<16x384xf32> to vector<16x384xbf16>
    %c0_11 = arith.constant 0 : index
    %c0_12 = arith.constant 0 : index
    %24 = vector.load %arg4[%c0_11, %c0_12] : memref<384x128xbf16, #tpu.memory_space<vmem>>, vector<384x128xbf16>
    %cst_13 = arith.constant dense<0.000000e+00> : vector<16x128xf32>
    %25 = tpu.matmul %23, %24, %cst_13 {dimension_numbers = #tpu.dot_dimension_numbers<[1], [0], [0], [1], [0, 0, 1, 1], [], []>} : vector<16x384xbf16>, vector<384x128xbf16>, vector<16x128xf32> -> vector<16x128xf32>
    %c0_14 = arith.constant 0 : index
    %c0_15 = arith.constant 0 : index
    %26 = vector.load %arg5[%c0_14, %c0_15] : memref<1x128xf32, #tpu.memory_space<vmem>>, vector<1x128xf32>
    %27 = vector.broadcast %26 : vector<1x128xf32> to vector<16x128xf32>
    %28 = arith.addf %25, %27 : vector<16x128xf32>
    %cst_16 = arith.constant 0.000000e+00 : f32
    %29 = vector.broadcast %cst_16 : f32 to vector<16x128xf32>
    %30 = arith.maximumf %28, %29 : vector<16x128xf32>
    %c0_17 = arith.constant 0 : index
    %c0_18 = arith.constant 0 : index
    %c0_19 = arith.constant 0 : index
    %31 = vector.load %arg7[%c0_17, %c0_18, %c0_19] : memref<1x16x128xf32, #tpu.memory_space<vmem>>, vector<1x16x128xf32>
    %32 = vector.shape_cast %31 : vector<1x16x128xf32> to vector<16x128xf32>
    %33 = vector.shape_cast %30 : vector<16x128xf32> to vector<1x16x128xf32>
    tpu.vector_store %arg7[%c0_17, %c0_18, %c0_19], %33 {strides = array<i32>} : memref<1x16x128xf32, #tpu.memory_space<vmem>>, vector<1x16x128xf32>,
    return
  }
  func.func @transform_0(%arg0: i32) -> (i32, i32, i32) {
    %c0_i32 = arith.constant 0 : i32
    %c0_i32_0 = arith.constant 0 : i32
    %c0_i32_1 = arith.constant 0 : i32
    return %arg0, %c0_i32, %c0_i32_0 : i32, i32, i32
  }
  func.func @transform_1(%arg0: i32) -> (i32, i32) {
    %c0_i32 = arith.constant 0 : i32
    %c0_i32_0 = arith.constant 0 : i32
    %c0_i32_1 = arith.constant 0 : i32
    return %c0_i32, %c0_i32_0 : i32, i32
  }
  func.func @transform_2(%arg0: i32) -> (i32, i32) {
    %c0_i32 = arith.constant 0 : i32
    %c0_i32_0 = arith.constant 0 : i32
    %c0_i32_1 = arith.constant 0 : i32
    return %c0_i32, %c0_i32_0 : i32, i32
  }
  func.func @transform_3(%arg0: i32) -> (i32, i32) {
    %c0_i32 = arith.constant 0 : i32
    %c0_i32_0 = arith.constant 0 : i32
    %c0_i32_1 = arith.constant 0 : i32
    return %c0_i32, %c0_i32_0 : i32, i32
  }
  func.func @transform_4(%arg0: i32) -> (i32, i32) {
    %c0_i32 = arith.constant 0 : i32
    %c0_i32_0 = arith.constant 0 : i32
    %c0_i32_1 = arith.constant 0 : i32
    return %c0_i32, %c0_i32_0 : i32, i32
  }
  func.func @transform_5(%arg0: i32) -> (i32, i32, i32) {
    %c0_i32 = arith.constant 0 : i32
    %c0_i32_0 = arith.constant 0 : i32
    %c0_i32_1 = arith.constant 0 : i32
    return %arg0, %c0_i32, %c0_i32_0 : i32, i32, i32
  }
  func.func @transform_6(%arg0: i32) -> (i32, i32, i32) {
    %c0_i32 = arith.constant 0 : i32
    %c0_i32_0 = arith.constant 0 : i32
    %c0_i32_1 = arith.constant 0 : i32
    return %arg0, %c0_i32, %c0_i32_0 : i32, i32, i32
  }
}

</mosaic_0001>

<bundles_post_ra>
// kernel: forward.1
= control target key start
LH: loop header
LB: loop body
LE: loop exit
PB: predicated region body
PF: predicated region fallthrough
CT: control target
= control target key end

     0   :  { %s1246_s21 = smov 0   ;;  %s1454_s0 = inlined_call_operand.vmem [shape: f32[2,18,128], index: 0, kind: input, shape index: {}]   ;;  %s1455_s1 = inlined_call_operand.vmem [shape: bf16[384,128], index: 1, kind: input, shape index: {}]   ;;  %s1456_s2 = inlined_call_operand.vmem [shape: f32[1,128], index: 2, kind: input, shape index: {}]   ;;  %s1457_s3 = inlined_call_operand.vmem [shape: bf16[384,128], index: 3, kind: input, shape index: {}]   ;;  %s1458_s4 = inlined_call_operand.vmem [shape: f32[1,128], index: 4, kind: input, shape index: {}]   ;;  %s1459_s5 = inlined_call_operand.vmem [shape: f32[2,16,128], index: 5, kind: output, shape index: {0}]   ;;  %s1460_s6 = inlined_call_operand.vmem [shape: f32[2,16,128], index: 6, kind: output, shape index: {1}]  }
   0x1 LB: > { %s967_s22 = sadd.s32 4294967295, %s1206_s21   ;;  %p971_p0 = scmp.ge.s32.totalorder %s1206_s21, 1  ;;  %s1206_s21 = sphi %s1246_s21, %s17_s21  }
   0x2   : > { %p215_p1 = scmp.lt.s32.totalorder %s1206_s21, 3 }
   0x4   : > { %p216_p2 = pnand %p971_p0, %p215_p1 }
   0x5   : > { %v1152_v0 = vld [vmem:[%s1455_s1 + $0x40] sm:$0xff] (!%p216_p2)   ;;  %v1208_v2 = vmov (!%p216_p2), 0.0   ;;  %v1155_v4 = vld [vmem:[%s1455_s1 + $0x48] sm:$0xff] (!%p216_p2)   ;;  %v1158_v7 = vld [vmem:[%s1455_s1 + $0x50] sm:$0xff] (!%p216_p2)   ;;  %vm1209_vm0 = vmmov (!%p216_p2), 0   ;;  %p250_p3 = scmp.lt.s32.totalorder (!%p216_p2), %s967_s22, 1 }
   0x6   : > { %219 = sbr.rel (%p216_p2) target bundleno = 490 (0x1ea), region = 40  ;;  %v1153_v1 = vld [vmem:[%s1455_s1] sm:$0xff] (!%p216_p2)   ;;  %1100 = vmatprep.subr.bf16.mxu1 (!%p216_p2), %v1208_v2  ;;  %1038 = vmatprep.subr.bf16.mxu0 (!%p216_p2), %v1152_v0  ;;  %v1156_v5 = vld [vmem:[%s1455_s1 + $0x8] sm:$0xff] (!%p216_p2)   ;;  %v1159_v8 = vld [vmem:[%s1455_s1 + $0x10] sm:$0xff] (!%p216_p2)   ;;  %vm272_vm1 = vcmask (!%p216_p2), 1046528   ;;  %vm280_vm2 = vcmask (!%p216_p2), 1045504  }
   0x7   : > { %v1154_v3 = vld [vmem:[%s1455_s1 + $0x80] sm:$0xff] (!%p216_p2)   ;;  %1039 = vmatpush3.bf16.msra.mxu0 (!%p216_p2), %v1153_v1  ;;  %v1157_v6 = vld [vmem:[%s1455_s1 + $0x88] sm:$0xff] (!%p216_p2)   ;;  %1116 = vmatprep.mubr.msk.bf16.mxu1 (!%p216_p2), %vm1209_vm0, %v1208_v2  ;;  %v1160_v9 = vld [vmem:[%s1455_s1 + $0x90] sm:$0xff] (!%p216_p2)   ;;  %vm578_vm3 = vcmask (!%p216_p2), 1040384   ;;  %vm1210_vm5 = vmmov (!%p216_p2), 1  }
   0x8   : > { %1101 = vmatpush3.bf16.msra.mxu1 (!%p216_p2), %v1154_v3  ;;  %1040 = vmatprep.subr.bf16.mxu0 (!%p216_p2), %v1155_v4  ;;  %v1161_v10 = vld [vmem:[%s1455_s1 + $0x58] sm:$0xff] (!%p216_p2)   ;;  %v1164_v13 = vld [vmem:[%s1455_s1 + $0x60] sm:$0xff] (!%p216_p2)   ;;  %v1167_v16 = vld [vmem:[%s1455_s1 + $0x68] sm:$0xff] (!%p216_p2)  }
   0x9   : > { %1102 = vmatprep.subr.bf16.mxu1 (!%p216_p2), %v1208_v2  ;;  %v1162_v11 = vld [vmem:[%s1455_s1 + $0x18] sm:$0xff] (!%p216_p2)   ;;  %v1165_v14 = vld [vmem:[%s1455_s1 + $0x20] sm:$0xff] (!%p216_p2)   ;;  %v1168_v17 = vld [vmem:[%s1455_s1 + $0x28] sm:$0xff] (!%p216_p2)  }
   0xa   : > { %v1163_v12 = vld [vmem:[%s1455_s1 + $0x98] sm:$0xff] (!%p216_p2)   ;;  %v1166_v15 = vld [vmem:[%s1455_s1 + $0xa0] sm:$0xff] (!%p216_p2)   ;;  %v1169_v18 = vld [vmem:[%s1455_s1 + $0xa8] sm:$0xff] (!%p216_p2)  }
   0xb   : > { %1041 = vmatpush3.bf16.msra.mxu0 (!%p216_p2), %v1156_v5  ;;  %v1170_v19 = vld [vmem:[%s1455_s1 + $0x70] sm:$0xff] (!%p216_p2)   ;;  %v1173_v22 = vld [vmem:[%s1455_s1 + $0x78] sm:$0xff] (!%p216_p2)   ;;  %v1176_v39 = vld [vmem:[%s1457_s3 + $0x40] sm:$0xff] (!%p216_p2)  }
   0xc   : > { %1103 = vmatpush3.bf16.msra.mxu1 (!%p216_p2), %v1157_v6  ;;  %1042 = vmatprep.subr.bf16.mxu0 (!%p216_p2), %v1158_v7  ;;  %v1171_v20 = vld [vmem:[%s1455_s1 + $0x30] sm:$0xff] (!%p216_p2)   ;;  %v1174_v30 = vld [vmem:[%s1455_s1 + $0x38] sm:$0xff] (!%p216_p2)   ;;  %v1177_v41 = vld [vmem:[%s1457_s3] sm:$0xff] (!%p216_p2)  }
   0xd   : > { %1104 = vmatprep.subr.bf16.mxu1 %v1208_v2  ;;  %s1462_s22 = smov (!%p250_p3, %s967_s22), 1  ;;  %v1172_v21 = vld [vmem:[%s1455_s1 + $0xb0] sm:$0xff]   ;;  %v1175_v36 = vld [vmem:[%s1455_s1 + $0xb8] sm:$0xff]   ;;  %v1178_v43 = vld [vmem:[%s1457_s3 + $0x80] sm:$0xff]  }
   0xe   : > { %s1140_s9 = smul.u32 24, %s1462_s22  ;;  %v1179_v44 = vld [vmem:[%s1457_s3 + $0x48] sm:$0xff]   ;;  %v1182_v47 = vld [vmem:[%s1457_s3 + $0x50] sm:$0xff]   ;;  %v1185_v50 = vld [vmem:[%s1457_s3 + $0x58] sm:$0xff]   ;;  %s1036_s13 = sshll.u32 %s1462_s22, 4 }
   0xf   : > { %1043 = vmatpush3.bf16.msra.mxu0 %v1159_v8  ;;  %v1180_v45 = vld [vmem:[%s1457_s3 + $0x8] sm:$0xff]   ;;  %v1183_v48 = vld [vmem:[%s1457_s3 + $0x10] sm:$0xff]   ;;  %v1186_v51 = vld [vmem:[%s1457_s3 + $0x18] sm:$0xff]   ;;  %s259_s16 = scalar_lea.vmem %s1459_s5, %s1036_s13  ;;  %s264_s23 = scalar_lea.vmem %s1460_s6, %s1036_s13 }
  0x10   : > { %1105 = vmatpush3.bf16.msra.mxu1 %v1160_v9  ;;  %1044 = vmatprep.subr.bf16.mxu0 %v1161_v10  ;;  %s254_s18 = scalar_lea.vmem %s1454_s0, %s1140_s9  ;;  %v1181_v46 = vld [vmem:[%s1457_s3 + $0x88] sm:$0xff]   ;;  %v1184_v49 = vld [vmem:[%s1457_s3 + $0x90] sm:$0xff]   ;;  %v1187_v52 = vld [vmem:[%s1457_s3 + $0x98] sm:$0xff]  }
  0x11   : > { %1106 = vmatprep.subr.bf16.mxu1 %v1208_v2  ;;  %v266_v23 = vld [vmem:[%s254_s18] sm:$0xff]  ;;  %v267_v24 = vld [vmem:[%s254_s18 + $0x8] sm:$0xff]  ;;  %v268_v25 = vld [vmem:[%s254_s18 + $0x10] sm:$0x3] }
  0x12   : > { %v273_v26 = vrot.slane %v266_v23, 1  ;;  %v274_v27 = vrot.slane %v267_v24, 1  ;;  %v276_v28 = vrot.slane %v268_v25, 1  ;;  %v284_v29 = vrot.slane %v268_v25, 2  ;;  %v1188_v53 = vld [vmem:[%s1457_s3 + $0x60] sm:$0xff]   ;;  %v1191_v56 = vld [vmem:[%s1457_s3 + $0x68] sm:$0xff]   ;;  %vm1027_vm4 = vmneg %vm578_vm3 }
  0x13   : > { %1045 = vmatpush3.bf16.msra.mxu0 %v1162_v11  ;;  %v281_v31 = vrot.slane %v266_v23, 2  ;;  %v282_v32 = vrot.slane %v267_v24, 2  ;;  %v288_v40 = vpack.c.bf16 %v267_v24, %v266_v23  ;;  %v1189_v54 = vld [vmem:[%s1457_s3 + $0x20] sm:$0xff]   ;;  %v1192_v57 = vld [vmem:[%s1457_s3 + $0x28] sm:$0xff]   ;;  %v1194_v59 = vld [vmem:[%s1457_s3 + $0x70] sm:$0xff]  }
  0x14   : > { %1107 = vmatpush3.bf16.msra.mxu1 %v1163_v12  ;;  %1046 = vmatprep.subr.bf16.mxu0 %v1164_v13  ;;  %v275_v33 = vsel %vm272_vm1, %v273_v26, %v274_v27  ;;  %v277_v34 = vsel %vm272_vm1, %v274_v27, %v276_v28  ;;  %v1190_v55 = vld [vmem:[%s1457_s3 + $0xa0] sm:$0xff]   ;;  %v1193_v58 = vld [vmem:[%s1457_s3 + $0xa8] sm:$0xff]   ;;  %v1195_v60 = vld [vmem:[%s1457_s3 + $0x30] sm:$0xff]  }
  0x15   : > { %1108 = vmatprep.subr.bf16.mxu1 %v1208_v2  ;;  %v289_v35 = vpack.c.bf16 %v277_v34, %v275_v33  ;;  %v283_v37 = vsel %vm280_vm2, %v281_v31, %v282_v32  ;;  %v285_v38 = vsel %vm280_vm2, %v282_v32, %v284_v29  ;;  %v1196_v61 = vld [vmem:[%s1457_s3 + $0xb0] sm:$0xff]   ;;  %v1197_v62 = vld [vmem:[%s1457_s3 + $0x78] sm:$0xff]   ;;  %v977_v4 = vld [vmem:[%s1456_s2] ss:$0 sm:$0xff] }
  0x16   : > { %v290_v42 = vpack.c.bf16 %v285_v38, %v283_v37  ;;  %v1198_v63 = vld [vmem:[%s1457_s3 + $0x38] sm:$0xff]   ;;  %vm1028_vm6 = vmpackc.low %vm1210_vm5, %vm1027_vm4  ;;  %v1002_v29 = vld [vmem:[%s1458_s4] ss:$0 sm:$0xff] }
  0x17   : > { %1047 = vmatpush3.bf16.msra.mxu0 %v1165_v14  ;;  %522 = vmatprep.mubr.bf16.mxu0 %v289_v35  ;;  %v1199_v0 = vld [vmem:[%s1457_s3 + $0xb8] sm:$0xff]   ;;  %vm1031_vm7 = vmpackc.low %vm272_vm1, %vm1210_vm5 }
  0x18   : > { %1109 = vmatpush3.bf16.msra.mxu1 %v1166_v15  ;;  %1048 = vmatprep.subr.bf16.mxu0 %v1167_v16 }
  0x19   : > { %1110 = vmatprep.subr.bf16.mxu1 %v1208_v2 }
  0x1b   : > { %1049 = vmatpush3.bf16.msra.mxu0 %v1168_v17 }
  0x1c   : > { %1111 = vmatpush3.bf16.msra.mxu1 %v1169_v18  ;;  %1050 = vmatprep.subr.bf16.mxu0 %v1170_v19 }
  0x1d   : > { %1112 = vmatprep.subr.bf16.mxu1 %v1208_v2 }
  0x1f   : > { %1051 = vmatpush3.bf16.msra.mxu0 %v1171_v20 }
  0x20   : > { %1113 = vmatpush3.bf16.msra.mxu1 %v1172_v21  ;;  %1052 = vmatprep.subr.bf16.mxu0 %v1173_v22 }
  0x21   : > { %1114 = vmatprep.subr.bf16.mxu1 %v1208_v2 }
  0x23   : > { %1053 = vmatpush3.bf16.msra.mxu0 %v1174_v30 }
  0x24   : > { %1115 = vmatpush3.bf16.msra.mxu1 %v1175_v36  ;;  %1069 = vmatprep.subr.bf16.mxu0 %v1176_v39 }
  0x25   : > { %1120 = vmatprep.subr.bf16.mxu1 %v1208_v2 }
  0x26   : > { %523 = vmatmul.mubr.bf16.vlgmr.msra.gmra.mrb[0].mxu0 %v288_v40 }
  0x27   : > { %1117 = vmatmul.mubr.bf16.vlgmr.msra.gmra.mrb[0].mxu1 %v290_v42  ;;  %1070 = vmatpush3.bf16.msra.mxu0 %v1177_v41 }
  0x28   : > { %1121 = vmatpush3.bf16.msra.mxu1 %v1178_v43  ;;  %1071 = vmatprep.subr.bf16.mxu0 %v1179_v44 }
  0x29   : > { %1122 = vmatprep.subr.bf16.mxu1 %v1208_v2  ;;  %1136 = vmatprep.mubr.msk.bf16.mxu1 %vm1209_vm0, %v1208_v2 }
  0x2b   : > { %1072 = vmatpush3.bf16.msra.mxu0 %v1180_v45 }
  0x2c   : > { %1123 = vmatpush3.bf16.msra.mxu1 %v1181_v46  ;;  %1073 = vmatprep.subr.bf16.mxu0 %v1182_v47 }
  0x2d   : > { %1124 = vmatprep.subr.bf16.mxu1 %v1208_v2 }
  0x2f   : > { %1074 = vmatpush3.bf16.msra.mxu0 %v1183_v48 }
  0x30   : > { %1125 = vmatpush3.bf16.msra.mxu1 %v1184_v49  ;;  %1075 = vmatprep.subr.bf16.mxu0 %v1185_v50 }
  0x31   : > { %1126 = vmatprep.subr.bf16.mxu1 %v1208_v2 }
  0x33   : > { %1076 = vmatpush3.bf16.msra.mxu0 %v1186_v51 }
  0x34   : > { %1127 = vmatpush3.bf16.msra.mxu1 %v1187_v52  ;;  %1077 = vmatprep.subr.bf16.mxu0 %v1188_v53 }
  0x35   : > { %1128 = vmatprep.subr.bf16.mxu1 %v1208_v2 }
  0x37   : > { %1078 = vmatpush3.bf16.msra.mxu0 %v1189_v54 }
  0x38   : > { %1129 = vmatpush3.bf16.msra.mxu1 %v1190_v55  ;;  %1079 = vmatprep.subr.bf16.mxu0 %v1191_v56 }
  0x39   : > { %1130 = vmatprep.subr.bf16.mxu1 %v1208_v2 }
  0x3b   : > { %1080 = vmatpush3.bf16.msra.mxu0 %v1192_v57 }
  0x3c   : > { %1131 = vmatpush3.bf16.msra.mxu1 %v1193_v58  ;;  %1081 = vmatprep.subr.bf16.mxu0 %v1194_v59 }
  0x3d   : > { %1132 = vmatprep.subr.bf16.mxu1 %v1208_v2 }
  0x3f   : > { %1082 = vmatpush3.bf16.msra.mxu0 %v1195_v60 }
  0x40   : > { %1133 = vmatpush3.bf16.msra.mxu1 %v1196_v61  ;;  %1083 = vmatprep.subr.bf16.mxu0 %v1197_v62 }
  0x41   : > { %1134 = vmatprep.subr.bf16.mxu1 %v1208_v2 }
  0x43   : > { %1084 = vmatpush3.bf16.msra.mxu0 %v1198_v63 }
  0x44   : > { %1135 = vmatpush3.bf16.msra.mxu1 %v1199_v0 }
  0xf9   : > { %v1054_v1 = vpop.f32.mrb[0].mxu0 }
  0xfa   : > { %v1055_v3 = vpop.f32.mrb[1].mxu0  ;;  %v565_v5 = vpop.f32.mrb[0].mxu1 }
  0xfb   : > { %v1056_v2 = vadd.f32 %v1055_v3, %v1054_v1  ;;  %v1057_v6 = vpop.f32.mrb[2].mxu0  ;;  %v1118_v7 = vpop.f32.mrb[1].mxu1 }
  0xfc   : > { %v1058_v8 = vpop.f32.mrb[3].mxu0  ;;  %v568_v9 = vpop.f32.mrb[2].mxu1 }
  0xfd   : > { %v525_v10 = vadd.f32 %v1056_v2, %v977_v4  ;;  %v1059_v11 = vadd.f32 %v1058_v8, %v1057_v6  ;;  %v1119_v12 = vpop.f32.mrb[3].mxu1 }
  0xff   : > { %v566_v13 = vadd.f32 %v565_v5, %v525_v10  ;;  %v528_v14 = vadd.f32 %v1059_v11, %v977_v4 }
 0x101   : > { %v572_v15 = vmax.f32 %v566_v13, 0.0  ;;  %v569_v16 = vadd.f32 %v568_v9, %v528_v14 }
 0x103   : > { %574 = vst [vmem:[%s259_s16] sm:$0xff] %v572_v15  ;;  %v573_v17 = vmax.f32 %v569_v16, 0.0  ;;  %v579_v18 = vrot.slane %v572_v15, 7  ;;  %v585_v19 = vrot.slane %v572_v15, 1 }
 0x105   : > { %575 = vst [vmem:[%s259_s16 + $0x8] sm:$0xff] %v573_v17  ;;  %v580_v20 = vrot.slane %v573_v17, 7  ;;  %v586_v21 = vrot.slane %v573_v17, 1  ;;  %v592_v22 = vpack.c.bf16 %v573_v17, %v572_v15 }
 0x107   : > { %v587_v23 = vsel %vm272_vm1, %v585_v19, %v586_v21  ;;  %825 = vmatprep.mubr.bf16.mxu0 %v592_v22  ;;  %v581_v24 = vsel %vm578_vm3, %v579_v18, %v580_v20 }
 0x108   : > { %v1032_v25 = vpack.c.bf16 %v586_v21, %v587_v23  ;;  %v1029_v26 = vpack.c.bf16 %v581_v24, %v579_v18 }
 0x10a   : > { %1030 = vmatmul.mubr.msk.bf16.vlgmr.msra.gmra.mrb[4].mxu0 %vm1028_vm6, %v1029_v26  ;;  %1137 = vmatmul.mubr.msk.bf16.vlgmr.msra.gmra.mrb[4].mxu1 %vm1031_vm7, %v1032_v25 }
 0x1dd   : > { %v1085_v27 = vpop.f32.mrb[4].mxu0  ;;  %v868_v28 = vpop.f32.mrb[4].mxu1 }
 0x1de   : > { %v1086_v30 = vpop.f32.mrb[5].mxu0  ;;  %v1138_v31 = vpop.f32.mrb[5].mxu1 }
 0x1df   : > { %v1087_v32 = vadd.f32 %v1086_v30, %v1085_v27  ;;  %v1088_v33 = vpop.f32.mrb[6].mxu0  ;;  %v871_v34 = vpop.f32.mrb[6].mxu1 }
 0x1e0   : > { %v1089_v35 = vpop.f32.mrb[7].mxu0  ;;  %v1139_v36 = vpop.f32.mrb[7].mxu1 }
 0x1e1   : > { %v828_v37 = vadd.f32 %v1087_v32, %v1002_v29  ;;  %v1090_v38 = vadd.f32 %v1089_v35, %v1088_v33 }
 0x1e3   : > { %v869_v39 = vadd.f32 %v868_v28, %v828_v37  ;;  %v831_v40 = vadd.f32 %v1090_v38, %v1002_v29 }
 0x1e5   : > { %v875_v41 = vmax.f32 %v869_v39, 0.0  ;;  %v872_v42 = vadd.f32 %v871_v34, %v831_v40 }
 0x1e7   : > { %877 = vst [vmem:[%s264_s23] sm:$0xff] %v875_v41  ;;  %v876_v43 = vmax.f32 %v872_v42, 0.0 }
 0x1e9   : > { %878 = vst [vmem:[%s264_s23 + $0x8] sm:$0xff] %v876_v43 }
 0x1ea PF: > { %s17_s21 = sadd.s32 1, %s1206_s21  }
 0x1eb   : > { %p14_p4 = scmp.ge.s32.totalorder %s17_s21, 4  }
 0x1ed   :  { %16 = sbr.rel (!%p14_p4) target bundleno = 1 (0x1), region = 82 }

</bundles_post_ra>
